<compile_context>
chip_gen: v5e
topology: v5e:2x2
jax: 0.10.0
libtpu: 0.0.40
codegen_flags: <defaults>
</compile_context>

<pallas_src>
import functools

import jax
import jax.numpy as jnp
import numpy as np
from jax import lax
from jax.experimental import pallas as pl
from jax.experimental.pallas import tpu as pltpu

KH = KW = 3          # 3x3 "same" convs, zero padding = 1
_BIAS_ROWS = 8       # all-ones block used to fold biases (keeps 8-row alignment)


@functools.lru_cache(maxsize=None)
def _roll_shift_sign():
    """One-time probe of pltpu.roll's rotation direction.

    The kernel needs rolled[:, j] == a[:, (j + s) % m].  With numpy-roll
    semantics (out[j] = a[(j - shift) % m]) that is shift = -s; with the
    opposite convention it is shift = +s.  Probing once at trace time makes
    the kernel immune to the convention either way.
    """
    def probe(x_ref, o_ref):
        o_ref[...] = pltpu.roll(x_ref[...], shift=1, axis=1)

    x = jnp.broadcast_to(jnp.arange(128, dtype=jnp.float32), (8, 128))
    out = pl.pallas_call(
        probe, out_shape=jax.ShapeDtypeStruct((8, 128), jnp.float32))(x)
    numpy_convention = int(jax.device_get(out)[0, 0]) == 127
    return -1 if numpy_convention else +1


def convgru_kernel(xT_ref, hT_ref, wf_ref, whn_ref, out_ref, *,
                   ch, img_h, img_w, shift_sign):
    f32 = jnp.float32
    xT = xT_ref[...]              # (Cp, m)  channel-major x (zero-padded channels)
    hT = hT_ref[...]              # (Ch, m)  channel-major hidden state
    m = xT.shape[-1]              # m = (#whole images in this block) * H * W

    # within-image (y, x) coordinate of every column (columns ordered (b, y, x))
    col = lax.broadcasted_iota(jnp.int32, (1, m), 1)
    xpos = col % img_w
    ypos = (col // img_w) % img_h

    def shifted(a, s):
        # a[:, (j + s) % m]; wrapped columns are always masked / multiplied by 0.
        if s == 0:
            return a
        return pltpu.roll(a, shift=(shift_sign * s) % m, axis=1)

    # ---- in-kernel im2col of x and h: 9 taps, zero-padded borders ----
    offs = [(dy, dx) for dy in (-1, 0, 1) for dx in (-1, 0, 1)]
    x_taps, h_taps = [], []
    for dy, dx in offs:
        s = dy * img_w + dx
        if dy == 0 and dx == 0:
            x_taps.append(xT)
            h_taps.append(hT)
            continue
        valid = ((ypos + dy >= 0) & (ypos + dy < img_h) &
                 (xpos + dx >= 0) & (xpos + dx < img_w))
        x_taps.append(jnp.where(valid, shifted(xT, s), 0.0))
        h_taps.append(jnp.where(valid, shifted(hT, s), 0.0))

    ones_blk = jnp.ones((_BIAS_ROWS, m), f32)        # folds the biases into the matmul
    patch = jnp.concatenate(x_taps + h_taps + [ones_blk], axis=0)    # (K, m)

    # ---- single fused gate matmul: rows [r | u | n(x-part only)] + biases ----
    g = jnp.dot(wf_ref[...], patch.astype(wf_ref.dtype),
                preferred_element_type=jnp.float32)                  # (3Ch, m)
    r = jax.nn.sigmoid(g[0:ch])
    u = jax.nn.sigmoid(g[ch:2 * ch])

    # ---- candidate conv on (r * h): per-tap roll of r times the already
    #      zero-padded h taps (wrapped r columns are killed by those zeros) ----
    rh_taps = []
    for t, (dy, dx) in enumerate(offs):
        s = dy * img_w + dx
        rh_taps.append(shifted(r, s) * h_taps[t])
    rh_patch = jnp.concatenate(rh_taps, axis=0)                      # (9Ch, m)

    n = jnp.tanh(g[2 * ch:3 * ch]
                 + jnp.dot(whn_ref[...], rh_patch.astype(whn_ref.dtype),
                           preferred_element_type=jnp.float32))

    out_ref[...] = ((1.0 - u) * hT + u * n).astype(out_ref.dtype)


def _w_flat(w):
    """PyTorch OIHW (Co, Ci, 3, 3) -> (Co, 9*Ci); columns ordered (tap, ci)."""
    return jnp.transpose(w, (0, 2, 3, 1)).reshape(w.shape[0], -1)


def _pad_in_channels(w, cp):
    co, ci, kh, kw = w.shape
    if ci == cp:
        return w
    return jnp.concatenate([w, jnp.zeros((co, cp - ci, kh, kw), w.dtype)], axis=1)


def convgru_cell_pallas(x, h, params, *, batch_blocks=1,
                        matmul_dtype=jnp.bfloat16):
    """x: (B, Cin, H, W), h: (B, Ch, H, W) (NCHW, PyTorch layout) -> (B, Ch, H, W).

    batch_blocks=1: single VMEM-resident step (v5e/v6e: one TensorCore, no
    pipeline overhead).  batch_blocks=k (dividing B): per-image-group grid
    marked "parallel" (v7x: each of the 2 TensorCores takes part of the batch).
    Blocks always span whole images, so the in-kernel roll/mask im2col stays valid.
    """
    B, Cin, H, W = x.shape
    Ch = h.shape[1]
    M = B * H * W
    assert B % batch_blocks == 0
    assert Ch % 8 == 0, "hidden_dim must be a multiple of 8 (sublane tiling)"
    Cp = -(-Cin // 8) * 8      # input channels padded up to a sublane multiple

    # ---- layout-only plumbing (tiny; the 9x im2col expansion happens in-kernel) ----
    xT = jnp.transpose(x, (1, 0, 2, 3)).reshape(Cin, M).astype(jnp.float32)
    xT = jnp.pad(xT, ((0, Cp - Cin), (0, 0)))
    hT = jnp.transpose(h, (1, 0, 2, 3)).reshape(Ch, M).astype(jnp.float32)

    wr, wu, wn = params["w_reset"], params["w_update"], params["w_new"]
    wr_x, wr_h = wr[:, :Cin], wr[:, Cin:]
    wu_x, wu_h = wu[:, :Cin], wu[:, Cin:]
    wn_x, wn_h = wn[:, :Cin], wn[:, Cin:]

    wx_blk = jnp.concatenate([_w_flat(_pad_in_channels(wr_x, Cp)),
                              _w_flat(_pad_in_channels(wu_x, Cp)),
                              _w_flat(_pad_in_channels(wn_x, Cp))], axis=0)   # (3Ch, 9Cp)
    wh_blk = jnp.concatenate([_w_flat(wr_h), _w_flat(wu_h),
                              jnp.zeros((Ch, KH * KW * Ch), jnp.float32)],
                             axis=0)                                          # (3Ch, 9Ch)
    bias = jnp.concatenate([params["b_reset"], params["b_update"],
                            params["b_new"]]).reshape(3 * Ch, 1)
    bias_blk = jnp.pad(bias, ((0, 0), (0, _BIAS_ROWS - 1)))                   # (3Ch, 8)
    wf = jnp.concatenate([wx_blk, wh_blk, bias_blk], axis=1).astype(matmul_dtype)
    whn = _w_flat(wn_h).astype(matmul_dtype)                                  # (Ch, 9Ch)
    Kf = wf.shape[1]                      # 9*Cp + 9*Ch + _BIAS_ROWS

    kern = functools.partial(convgru_kernel, ch=Ch, img_h=H, img_w=W,
                             shift_sign=_roll_shift_sign())

    if batch_blocks == 1:
        # Whole problem (~24 KiB of kernel inputs) lives in VMEM; no grid, so
        # no pipeline prologue and no double-buffered input allocation.
        vmem = pl.BlockSpec(memory_space=pltpu.MemorySpace.VMEM)
        out = pl.pallas_call(
            kern,
            out_shape=jax.ShapeDtypeStruct((Ch, M), jnp.float32),
            in_specs=[vmem, vmem, vmem, vmem],
            out_specs=vmem,
        )(xT, hT, wf, whn)
    else:
        Mb = M // batch_blocks            # whole images per block (invariant!)
        out = pl.pallas_call(
            kern,
            out_shape=jax.ShapeDtypeStruct((Ch, M), jnp.float32),
            grid=(batch_blocks,),
            in_specs=[
                pl.BlockSpec((Cp, Mb), lambda i: (0, i)),
                pl.BlockSpec((Ch, Mb), lambda i: (0, i)),
                pl.BlockSpec((3 * Ch, Kf), lambda i: (0, 0)),
                pl.BlockSpec((Ch, KH * KW * Ch), lambda i: (0, 0)),
            ],
            out_specs=pl.BlockSpec((Ch, Mb), lambda i: (0, i)),
            compiler_params=pltpu.CompilerParams(
                dimension_semantics=("parallel",)),
        )(xT, hT, wf, whn)

    # back to NCHW
    return jnp.transpose(out.reshape(Ch, B, H, W), (1, 0, 2, 3))


def convgru_cell_ref(x, h, p):
    """Pure-JAX reference mirroring the PyTorch ConvGRUCell.forward (NCHW)."""
    def conv(inp, w, b):
        y = lax.conv_general_dilated(
            inp, w, window_strides=(1, 1), padding="SAME",
            dimension_numbers=("NCHW", "OIHW", "NCHW"))
        return y + b.reshape(1, -1, 1, 1)

    xh = jnp.concatenate([x, h], axis=1)
    r = jax.nn.sigmoid(conv(xh, p["w_reset"], p["b_reset"]))
    u = jax.nn.sigmoid(conv(xh, p["w_update"], p["b_update"]))
    xrh = jnp.concatenate([x, r * h], axis=1)
    n = jnp.tanh(conv(xrh, p["w_new"], p["b_new"]))
    return (1.0 - u) * h + u * n


if __name__ == "__main__":
    # batch=2, input_dim=4, hidden_dim=8, spatial 16x16, kernel_size=3, zeros padding.
    B, Cin, Ch, H, W = 2, 4, 8, 16, 16

    key = jax.random.PRNGKey(0)
    ks = jax.random.split(key, 8)
    scale = 0.1
    params = {
        "w_reset":  scale * jax.random.normal(ks[0], (Ch, Cin + Ch, KH, KW), jnp.float32),
        "b_reset":  scale * jax.random.normal(ks[1], (Ch,), jnp.float32),
        "w_update": scale * jax.random.normal(ks[2], (Ch, Cin + Ch, KH, KW), jnp.float32),
        "b_update": scale * jax.random.normal(ks[3], (Ch,), jnp.float32),
        "w_new":    scale * jax.random.normal(ks[4], (Ch, Cin + Ch, KH, KW), jnp.float32),
        "b_new":    scale * jax.random.normal(ks[5], (Ch,), jnp.float32),
    }

    x = jax.random.normal(ks[6], (B, Cin, H, W), jnp.float32)   # PyTorch NCHW
    h = jax.random.normal(ks[7], (B, Ch, H, W), jnp.float32)

    ref = jax.block_until_ready(convgru_cell_ref(x, h, params))

    # Single-step path (v5e / v6e: one TensorCore, no pipeline overhead).
    out1 = jax.block_until_ready(convgru_cell_pallas(x, h, params))
    # Per-image "parallel" grid path (v7x: one image per TensorCore).
    out2 = jax.block_until_ready(convgru_cell_pallas(x, h, params, batch_blocks=B))

    for out in (out1, out2):
        assert out.shape == (B, Ch, H, W)
        err = float(np.max(np.abs(np.asarray(out) - np.asarray(ref))))
        # bf16 MXU operands with f32 accumulation: expect ~1e-2-level agreement.
        assert np.allclose(np.asarray(out), np.asarray(ref), atol=3e-2, rtol=3e-2), err

    print("KERNEL_OK")
</pallas_src>

<mosaic_0001>
module attributes {stable_mosaic.version = 11 : i64} {
  func.func @probe(%arg0: memref<8x128xf32, #tpu.memory_space<vmem>>, %arg1: memref<8x128xf32, #tpu.memory_space<vmem>>) attributes {dimension_semantics = [], scalar_prefetch = 0 : i64, scratch_operands = 0 : i64, tpu.core_type = #tpu.core_type<tc>} {
    %c0 = arith.constant 0 : index
    %c0_0 = arith.constant 0 : index
    %0 = vector.load %arg0[%c0, %c0_0] : memref<8x128xf32, #tpu.memory_space<vmem>>, vector<8x128xf32>
    %c1_i32 = arith.constant 1 : i32
    %1 = tpu.dynamic_rotate %0 by %c1_i32 dim 1 : vector<8x128xf32>, i32 -> vector<8x128xf32>
    %c0_1 = arith.constant 0 : index
    %c0_2 = arith.constant 0 : index
    %2 = vector.load %arg1[%c0_1, %c0_2] : memref<8x128xf32, #tpu.memory_space<vmem>>, vector<8x128xf32>
    tpu.vector_store %arg1[%c0_1, %c0_2], %1 {strides = array<i32>} : memref<8x128xf32, #tpu.memory_space<vmem>>, vector<8x128xf32>,
    return
  }
}

</mosaic_0001>

<bundles_post_ra>
// kernel: tpu_custom_call.1
= control target key start
LH: loop header
LB: loop body
LE: loop exit
PB: predicated region body
PF: predicated region fallthrough
CT: control target
= control target key end

     0   :  { %6 = vsyncpa [#allocation3], 0  ;;  %s118_s0 = inlined_call_operand.hbm [shape: f32[8,128], index: 0, kind: input, shape index: {}]   ;;  %s119_s1 = inlined_call_operand.hbm [shape: f32[8,128], index: 1, kind: output, shape index: {}]  }
   0x1   :  { %7 = vsyncpa [#allocation4], 0  ;;  %s13_s8 = sshll.u32 %s118_s0, 4  ;;  %s99_s9 = smov [#allocation2]   ;;  %s14_s8 = int_to_ptr.hbm [resolvable:$true] %s13_s8 }
   0x2   :  { %s15_s10 = sshll.u32 %s99_s9, 4  ;;  %s16_s10 = int_to_ptr.vmem [resolvable:$true] %s15_s10 }
   0x3   :  { %18 = dma.hbm_to_vmem [thread:$0]  %s14_s8, 128, %s16_s10, [#allocation3]  }
   0x4   :  { %95 = dma.done.wait [#allocation3], 128  }
   0x5   :  { %96 = vsyncadd [#allocation3], 4294967168  ;;  %v23_v0 = vld [vmem:[#allocation2] sm:$0xff]  ;;  %s100_s11 = smov 1   ;;  %s101_s12 = smov [#allocation5]  }
   0x6   :  { %24 = vrot.lane.b32.xlu0 %v23_v0, %s100_s11  ;;  %s32_s13 = sshll.u32 %s101_s12, 4  ;;  %s34_s16 = sshll.u32 %s119_s1, 4  ;;  %s33_s13 = int_to_ptr.vmem [resolvable:$true] %s32_s13  ;;  %s35_s16 = int_to_ptr.hbm [resolvable:$true] %s34_s16 }
  0x78   :  { %v25_v1 = vpop.permute.xlu0 %24 }
  0x79   :  { %26 = vst [vmem:[#allocation5] sm:$0xff] %v25_v1 }
  0x7a   :  { %37 = dma.vmem_to_hbm [thread:$0]  %s33_s13, 128, %s35_s16, [#allocation4]  }
  0x7b   :  { %97 = dma.done.wait [#allocation4], 128  }
  0x7c   :  { %98 = vsyncadd [#allocation4], 4294967168 }
  0x7d   :  { %42 = vsyncpa [#allocation3], 1 }
  0x7e   :  { %43 = vsyncpa [#allocation4], 1 }

</bundles_post_ra>
